<compile_context>
chip_gen: v7x
topology: tpu7x:2x2x1
jax: 0.10.0
libtpu: 0.0.40
codegen_flags: <defaults>
</compile_context>

<pallas_src>
import functools

import jax
import jax.numpy as jnp
from jax.experimental import pallas as pl
from jax.experimental.pallas import tpu as pltpu


_LANE = 128


# ---------------------------------------------------------------------------
# Device-aware knobs.
# ---------------------------------------------------------------------------
def _device_kind() -> str:
    try:
        return jax.devices()[0].device_kind.lower()
    except Exception:
        return ""


def _target_block_bytes() -> int:
    # ~2 MiB/stream on v7x (3.2 TB/s HBM needs bigger steps to hide ~0.35 us
    # per-step overhead), ~1 MiB/stream on v5e/v6e.
    return (2 << 20) if "v7" in _device_kind() else (1 << 20)


def _is_megacore() -> bool:
    return "v7" in _device_kind()


def _compute_dtype(dtype):
    # bf16 VALUs exist on v6e/v7x; keep f32 upcast on v5-gen and other dtypes.
    dt = jnp.dtype(dtype)
    if dt == jnp.dtype(jnp.bfloat16) and "v5" not in _device_kind():
        return jnp.bfloat16
    return jnp.float32 if dt != jnp.dtype(jnp.float32) else jnp.float32


# ---------------------------------------------------------------------------
# Tiling: lane/sublane-dense (TB, TN) for a cdiv grid over (B, N).
# ---------------------------------------------------------------------------
def _pick_tiles(B, N, itemsize, target_bytes, split_for_megacore):
    sub = 8 if itemsize >= 4 else 16                # sublane tile per dtype
    b_sub_tiles = pl.cdiv(B, sub)

    if N >= _LANE:
        n_lane_tiles = pl.cdiv(N, _LANE)
        max_tn_tiles = max(1, target_bytes // (sub * _LANE * itemsize))
        TN = min(n_lane_tiles, max_tn_tiles) * _LANE
    else:
        TN = N                                      # < one lane tile: full dim

    # If TN was capped by N, grow TB in sublane multiples toward the target.
    row_bytes = max(1, TN * itemsize)
    max_tb_tiles = max(1, target_bytes // (sub * row_bytes))
    TB = min(b_sub_tiles, max_tb_tiles) * sub

    # v7x megacore: make sure at least one parallel axis has >= 2 grid steps.
    if split_for_megacore and pl.cdiv(B, TB) == 1 and pl.cdiv(N, TN) == 1:
        if N >= 2 * _LANE:
            TN = _LANE * pl.cdiv(pl.cdiv(N, _LANE), 2)
        elif B >= 2 * sub:
            TB = sub * pl.cdiv(pl.cdiv(B, sub), 2)

    # A single block covering a whole axis can just be the full extent
    # (block == full dim is always legal and avoids padded over-allocation).
    if TB >= B:
        TB = B
    if TN >= N:
        TN = N
    return TB, TN


def _vmem_limit(per_block_bytes, n_streams, tb):
    # n_streams double-buffered blocks + f32 scale column + compiler headroom.
    return int(max(8 << 20, 2 * n_streams * per_block_bytes + 2 * tb * 4 + (4 << 20)))


# ---------------------------------------------------------------------------
# Kernels.
# ---------------------------------------------------------------------------
def _scale_kernel(scale_ref, old_ref, other_ref, out_ref, *, from_new, compute_dtype):
    """out = old + scale * (new - old)   or   out = old + scale * residual."""
    s = scale_ref[...].astype(compute_dtype)        # (TB, 1), lane-broadcast
    old = old_ref[...].astype(compute_dtype)        # (TB, TN)
    oth = other_ref[...].astype(compute_dtype)
    res = (oth - old) if from_new else oth
    out_ref[...] = (old + s * res).astype(out_ref.dtype)


def _add_kernel(old_ref, res_ref, out_ref):
    """Identity path: out = old + residual (no scale stream)."""
    out_ref[...] = (old_ref[...] + res_ref[...]).astype(out_ref.dtype)


# ---------------------------------------------------------------------------
# pallas_call wrappers.
# ---------------------------------------------------------------------------
def _run_scaled_2d(old2d, other2d, scale_f32, *, from_new):
    B, N = old2d.shape
    itemsize = jnp.dtype(old2d.dtype).itemsize
    TB, TN = _pick_tiles(B, N, itemsize, _target_block_bytes(), _is_megacore())
    grid = (pl.cdiv(B, TB), pl.cdiv(N, TN))
    per_block = TB * TN * itemsize

    scale2d = scale_f32.reshape(B, 1).astype(jnp.float32)
    kernel = functools.partial(_scale_kernel, from_new=from_new,
                               compute_dtype=_compute_dtype(old2d.dtype))
    cost = pl.CostEstimate(flops=3 * B * N, transcendentals=0,
                           bytes_accessed=3 * B * N * itemsize + B * 4)

    # TODO(synk): expose input_output_aliases={1: 0} for callers that can
    # donate `old` (saves one B*N HBM allocation; unsafe by default in eager).
    return pl.pallas_call(
        kernel,
        out_shape=jax.ShapeDtypeStruct((B, N), old2d.dtype),
        grid=grid,
        in_specs=[
            pl.BlockSpec((TB, 1), lambda i, j: (i, 0)),    # f32 scale column
            pl.BlockSpec((TB, TN), lambda i, j: (i, j)),   # old
            pl.BlockSpec((TB, TN), lambda i, j: (i, j)),   # new / residual
        ],
        out_specs=pl.BlockSpec((TB, TN), lambda i, j: (i, j)),
        compiler_params=pltpu.CompilerParams(
            dimension_semantics=("parallel", "parallel"),
            vmem_limit_bytes=_vmem_limit(per_block, 3, TB),
        ),
        cost_estimate=cost,
    )(scale2d, old2d, other2d)


def _run_add_2d(old2d, res2d):
    B, N = old2d.shape
    itemsize = jnp.dtype(old2d.dtype).itemsize
    TB, TN = _pick_tiles(B, N, itemsize, _target_block_bytes(), _is_megacore())
    grid = (pl.cdiv(B, TB), pl.cdiv(N, TN))
    per_block = TB * TN * itemsize
    cost = pl.CostEstimate(flops=B * N, transcendentals=0,
                           bytes_accessed=3 * B * N * itemsize)
    return pl.pallas_call(
        _add_kernel,
        out_shape=jax.ShapeDtypeStruct((B, N), old2d.dtype),
        grid=grid,
        in_specs=[
            pl.BlockSpec((TB, TN), lambda i, j: (i, j)),
            pl.BlockSpec((TB, TN), lambda i, j: (i, j)),
        ],
        out_specs=pl.BlockSpec((TB, TN), lambda i, j: (i, j)),
        compiler_params=pltpu.CompilerParams(
            dimension_semantics=("parallel", "parallel"),
            vmem_limit_bytes=_vmem_limit(per_block, 3, TB),
        ),
        cost_estimate=cost,
    )(old2d, res2d)


# ---------------------------------------------------------------------------
# Module wrapper (JAX/Pallas port of the PyTorch DropPath module).
# ---------------------------------------------------------------------------
class DropPath:
    def __init__(self, drop_prob: float = 0.0):
        self.drop_prob = float(drop_prob)
        self.training = True

    @staticmethod
    def _flatten(x):
        return x.reshape(x.shape[0], -1)

    def __call__(self, old, new=None, residual=None, *, key=None):
        assert (new is not None) or (residual is not None)

        # Identity fast path (drop_prob == 0 or eval mode).
        if self.drop_prob == 0.0 or not self.training:
            if new is not None:
                return new                         # bit-exact, no kernel launch
            out2d = _run_add_2d(self._flatten(old), self._flatten(residual))
            return out2d.reshape(old.shape)

        # Training with drop_prob > 0: per-sample stochastic depth.
        assert key is not None, "PRNG key required in training mode"
        B = old.shape[0]
        keep_prob = 1.0 - self.drop_prob
        u = jax.random.uniform(key, (B,), dtype=jnp.float32)
        # torch: floor(keep_prob + rand) == 1  <=>  rand >= drop_prob
        scale = (u >= self.drop_prob).astype(jnp.float32) / keep_prob
        other = new if new is not None else residual
        out2d = _run_scaled_2d(self._flatten(old), self._flatten(other), scale,
                               from_new=new is not None)
        return out2d.reshape(old.shape)


if __name__ == "__main__":
    key = jax.random.PRNGKey(0)
    k_old, k_new, k_res, k_drop = jax.random.split(key, 4)

    B, C, H, W = 2, 4, 16, 16                      # NCHW, C*H*W = 1024
    old = jax.random.normal(k_old, (B, C, H, W), dtype=jnp.float32)
    new = jax.random.normal(k_new, (B, C, H, W), dtype=jnp.float32)
    residual = jax.random.normal(k_res, (B, C, H, W), dtype=jnp.float32)

    u = jax.random.uniform(k_drop, (B,), dtype=jnp.float32)
    scale = (u >= 0.25).astype(jnp.float32) / 0.75

    dp = DropPath(drop_prob=0.25)
    dp.training = True

    # --- training, `new` given ---
    out_new = dp(old, new=new, key=k_drop)
    jax.block_until_ready(out_new)
    ref = old + scale[:, None, None, None] * (new - old)
    assert jnp.allclose(out_new, ref, atol=1e-5, rtol=1e-5)

    # --- training, `residual` given ---
    out_res = dp(old, residual=residual, key=k_drop)
    jax.block_until_ready(out_res)
    ref_res = old + scale[:, None, None, None] * residual
    assert jnp.allclose(out_res, ref_res, atol=1e-5, rtol=1e-5)

    # --- eval fast paths ---
    dp.training = False
    assert jnp.array_equal(dp(old, new=new), new)          # bit-exact, no kernel
    out_eval = dp(old, residual=residual)
    jax.block_until_ready(out_eval)
    assert jnp.allclose(out_eval, old + residual, atol=1e-5, rtol=1e-5)
    dp.training = True

    # --- drop_prob == 0 ---
    dp0 = DropPath(drop_prob=0.0)
    assert jnp.array_equal(dp0(old, new=new), new)
    out0 = dp0(old, residual=residual)
    jax.block_until_ready(out0)
    assert jnp.allclose(out0, old + residual, atol=1e-5, rtol=1e-5)

    # --- bf16 inputs (bf16-native compute on v6e/v7x, f32 on v5-gen) ---
    old_bf = old.astype(jnp.bfloat16)
    res_bf = residual.astype(jnp.bfloat16)
    out_bf = dp(old_bf, residual=res_bf, key=k_drop)
    jax.block_until_ready(out_bf)
    ref_bf = (old_bf.astype(jnp.float32)
              + scale[:, None, None, None] * res_bf.astype(jnp.float32))
    assert out_bf.dtype == jnp.bfloat16
    assert jnp.allclose(out_bf.astype(jnp.float32), ref_bf, atol=6e-2, rtol=6e-2)

    # --- ragged shape: B % 8 != 0, features % 128 != 0 (cdiv tiling path) ---
    B2, S2, D2 = 3, 5, 77                                  # N = 385
    old_r = jax.random.normal(k_old, (B2, S2, D2), dtype=jnp.float32)
    new_r = jax.random.normal(k_new, (B2, S2, D2), dtype=jnp.float32)
    out_r = dp(old_r, new=new_r, key=k_drop)
    jax.block_until_ready(out_r)
    u_r = jax.random.uniform(k_drop, (B2,), dtype=jnp.float32)
    scale_r = (u_r >= 0.25).astype(jnp.float32) / 0.75
    ref_r = old_r + scale_r[:, None, None] * (new_r - old_r)
    assert jnp.allclose(out_r, ref_r, atol=1e-5, rtol=1e-5)

    print("KERNEL_OK")
</pallas_src>

<mosaic_0001>
module attributes {stable_mosaic.version = 11 : i64} {
  func.func @_scale_kernel(%arg0: i32, %arg1: i32, %arg2: memref<2x1xf32, #tpu.memory_space<vmem>>, %arg3: memref<2x1024xf32, #tpu.memory_space<vmem>>, %arg4: memref<2x1024xf32, #tpu.memory_space<vmem>>, %arg5: memref<2x1024xf32, #tpu.memory_space<vmem>>) attributes {dimension_semantics = [#tpu.dimension_semantics<parallel>, #tpu.dimension_semantics<parallel>], iteration_bounds = array<i64: 1, 1>, scalar_prefetch = 0 : i64, scratch_operands = 0 : i64, tpu.core_type = #tpu.core_type<tc>, window_params = [{transform_indices = @transform_0, window_bounds = array<i64: 2, 1>}, {transform_indices = @transform_1, window_bounds = array<i64: 2, 1024>}, {transform_indices = @transform_2, window_bounds = array<i64: 2, 1024>}, {transform_indices = @transform_3, window_bounds = array<i64: 2, 1024>}]} {
    %c0 = arith.constant 0 : index
    %c0_0 = arith.constant 0 : index
    %0 = vector.load %arg2[%c0, %c0_0] : memref<2x1xf32, #tpu.memory_space<vmem>>, vector<2x1xf32>
    %c0_1 = arith.constant 0 : index
    %c0_2 = arith.constant 0 : index
    %1 = vector.load %arg3[%c0_1, %c0_2] : memref<2x1024xf32, #tpu.memory_space<vmem>>, vector<2x1024xf32>
    %c0_3 = arith.constant 0 : index
    %c0_4 = arith.constant 0 : index
    %2 = vector.load %arg4[%c0_3, %c0_4] : memref<2x1024xf32, #tpu.memory_space<vmem>>, vector<2x1024xf32>
    %3 = arith.subf %2, %1 : vector<2x1024xf32>
    %4 = vector.broadcast %0 : vector<2x1xf32> to vector<2x1024xf32>
    %5 = arith.mulf %4, %3 : vector<2x1024xf32>
    %6 = arith.addf %1, %5 : vector<2x1024xf32>
    %c0_5 = arith.constant 0 : index
    %c0_6 = arith.constant 0 : index
    %7 = vector.load %arg5[%c0_5, %c0_6] : memref<2x1024xf32, #tpu.memory_space<vmem>>, vector<2x1024xf32>
    tpu.vector_store %arg5[%c0_5, %c0_6], %6 {strides = array<i32>} : memref<2x1024xf32, #tpu.memory_space<vmem>>, vector<2x1024xf32>,
    return
  }
  func.func @transform_0(%arg0: i32, %arg1: i32) -> (i32, i32) {
    %c0_i32 = arith.constant 0 : i32
    %c0_i32_0 = arith.constant 0 : i32
    return %arg0, %c0_i32 : i32, i32
  }
  func.func @transform_1(%arg0: i32, %arg1: i32) -> (i32, i32) {
    %c0_i32 = arith.constant 0 : i32
    return %arg0, %arg1 : i32, i32
  }
  func.func @transform_2(%arg0: i32, %arg1: i32) -> (i32, i32) {
    %c0_i32 = arith.constant 0 : i32
    return %arg0, %arg1 : i32, i32
  }
  func.func @transform_3(%arg0: i32, %arg1: i32) -> (i32, i32) {
    %c0_i32 = arith.constant 0 : i32
    return %arg0, %arg1 : i32, i32
  }
}

</mosaic_0001>

<bundles_post_ra>
// kernel: tpu_custom_call.1
= control target key start
LH: loop header
LB: loop body
LE: loop exit
PB: predicated region body
PF: predicated region fallthrough
CT: control target
= control target key end

     0   :  { %8 = vsyncpa [#allocation3], 0  ;;  %s309_s0 = inlined_call_operand.vmem [shape: f32[2,1], index: 0, kind: input, shape index: {}]   ;;  %s310_s1 = inlined_call_operand.hbm [shape: f32[2,1024], index: 1, kind: input, shape index: {}]   ;;  %s311_s2 = inlined_call_operand.hbm [shape: f32[2,1024], index: 2, kind: input, shape index: {}]   ;;  %s312_s3 = inlined_call_operand.hbm [shape: f32[2,1024], index: 3, kind: output, shape index: {}]  }
   0x1   :  { %9 = vsyncpa [#allocation6], 0 }
   0x2   :  { %10 = vsyncpa [#allocation4], 0  ;;  %s245_s12 = smov [#allocation2]   ;;  %s246_s14 = smov [#allocation5]  }
   0x3   :  { %s19_s13 = sshll.u32 %s245_s12, 4  ;;  %s29_s15 = sshll.u32 %s246_s14, 4  ;;  %s20_s13 = int_to_ptr.vmem [resolvable:$true] %s19_s13  ;;  %s30_s15 = int_to_ptr.vmem [resolvable:$true] %s29_s15 }
   0x4   :  { %s173_s18 = scalar_lea.hbm %s310_s1, 256 }
   0x5   :  { %p174_p0 = scmp.ne.s32.totalorder %s310_s1, %s173_s18  ;;  %p177_p1 = scmp.lt.u32.totalorder %s173_s18, %s310_s1 }
   0x7   :  { %p179_p2 = pnand %p177_p1, %p174_p0 }
   0x9   :  { %182 = shalt.err (!%p179_p2)
}
   0xa   :  { %s183_s23 = scalar_lea.vmem %s20_s13, 256  ;;  %p188_p4 = scmp.lt.s32.totalorder %s20_s13, %s20_s13 }
   0xb   :  { %p184_p3 = scmp.ne.s32.totalorder %s20_s13, %s183_s23  ;;  %p189_p5 = scmp.lt.s32.totalorder %s183_s23, %s183_s23 }
   0xd   :  { %p190_p6 = por %p189_p5, %p188_p4 }
   0xf   :  { %p191_p7 = pnand %p190_p6, %p184_p3 }
  0x11   :  { %194 = shalt.err (!%p191_p7)
}
  0x12   :  { %22 = dma.hbm_to_vmem [thread:$0]  %s310_s1, 256, %s20_s13, [#allocation3]  }
  0x13   :  { %s195_s28 = scalar_lea.hbm %s311_s2, 256 }
  0x14   :  { %p196_p8 = scmp.ne.s32.totalorder %s311_s2, %s195_s28  ;;  %p199_p9 = scmp.lt.u32.totalorder %s195_s28, %s311_s2 }
  0x16   :  { %p201_p10 = pnand %p199_p9, %p196_p8 }
  0x18   :  { %204 = shalt.err (!%p201_p10)
}
  0x19   :  { %s205_s6 = scalar_lea.vmem %s30_s15, 256  ;;  %p210_p12 = scmp.lt.s32.totalorder %s30_s15, %s30_s15 }
  0x1a   :  { %p206_p11 = scmp.ne.s32.totalorder %s30_s15, %s205_s6  ;;  %p211_p13 = scmp.lt.s32.totalorder %s205_s6, %s205_s6 }
  0x1c   :  { %p212_p0 = por %p211_p13, %p210_p12 }
  0x1e   :  { %p213_p1 = pnand %p212_p0, %p206_p11 }
  0x20   :  { %216 = shalt.err (!%p213_p1)
}
  0x21   :  { %32 = dma.hbm_to_vmem [thread:$0]  %s311_s2, 256, %s30_s15, [#allocation6]  }
  0x22   :  { %239 = dma.done.wait [#allocation3], 256  }
  0x23   :  { %240 = vsyncadd [#allocation3], 4294967040 }
  0x24   :  { %241 = dma.done.wait [#allocation6], 256  }
  0x25   :  { %242 = vsyncadd [#allocation6], 4294967040  ;;  %v247_v0 = vmov 0   ;;  %v39_v1 = vld [vmem:[%s309_s0] sm:$0x3]  ;;  %v57_v4 = vlaneseq  ;;  %v40_v5 = vld [vmem:[#allocation2] sm:$0xff] }
  0x26   :  { %172 = vset.pattern.permute.xlu0 %v247_v0  ;;  %v248_v2 = vmov 1983009808   ;;  %v42_v6 = vld [vmem:[#allocation5] sm:$0xff]  ;;  %v41_v7 = vld [vmem:[#allocation2 + $0x8] sm:$0xff]  ;;  %v43_v8 = vld [vmem:[#allocation5 + $0x8] sm:$0xff]  ;;  %s249_s0 = smov [#allocation7]  }
  0x27   :  { %48 = vperm.xlu0 %172, %v39_v1   ;;  %v55_v3 = vunpack.c.l.s4 %v248_v2  ;;  %v44_v9 = vsub.f32 %v42_v6, %v40_v5  ;;  %v58_v11 = vshrl.u32 %v57_v4, 7  ;;  %v45_v12 = vsub.f32 %v43_v8, %v41_v7  ;;  %s157_s2 = sshll.u32 %s249_s0, 4  ;;  %s158_s2 = int_to_ptr.vmem [resolvable:$true] %s157_s2 }
  0x28   :  { %s217_s10 = scalar_lea.vmem %s158_s2, 256  ;;  %p222_p3 = scmp.lt.s32.totalorder %s158_s2, %s158_s2 }
  0x29   :  { %v56_v10 = vunpack.c.0.s8 %v55_v3  ;;  %v53_v13 = vcombine.high %v44_v9, %v44_v9  ;;  %v70_v15 = vcombine.high %v45_v12, %v45_v12  ;;  %p218_p2 = scmp.ne.s32.totalorder %s158_s2, %s217_s10  ;;  %p223_p4 = scmp.lt.s32.totalorder %s217_s10, %s217_s10 }
  0x2b   :  { %v59_v14 = vsub.s32 %v56_v10, %v58_v11  ;;  %p224_p5 = por %p223_p4, %p222_p3 }
  0x2d   :  { %v60_v16 = vrot.slane %v44_v9, %v59_v14  ;;  %v67_v17 = vrot.slane %v53_v13, %v59_v14  ;;  %v77_v18 = vrot.slane %v45_v12, %v59_v14  ;;  %v84_v19 = vrot.slane %v70_v15, %v59_v14  ;;  %p225_p6 = pnand %p224_p5, %p218_p2 }
  0x2f   :  { %v68_v20 = vcombine.high %v60_v16, %v60_v16  ;;  %v69_v21 = vcombine.high %v67_v17, %v67_v17  ;;  %v85_v22 = vcombine.high %v77_v18, %v77_v18  ;;  %v86_v23 = vcombine.high %v84_v19, %v84_v19 }
  0xa6   :  { %v49_v24 = vpop.permute.xlu0 %48 }
  0xa7   :  { %v95_v25 = vmul.f32 %v60_v16, %v49_v24  ;;  %v96_v26 = vmul.f32 %v68_v20, %v49_v24  ;;  %v97_v27 = vmul.f32 %v67_v17, %v49_v24  ;;  %v98_v28 = vmul.f32 %v69_v21, %v49_v24 }
  0xa8   :  { %v99_v29 = vmul.f32 %v77_v18, %v49_v24  ;;  %v100_v30 = vmul.f32 %v85_v22, %v49_v24  ;;  %v101_v31 = vmul.f32 %v84_v19, %v49_v24  ;;  %v102_v32 = vmul.f32 %v86_v23, %v49_v24 }
  0xa9   :  { %v111_v33 = vcombine.low %v95_v25, %v96_v26  ;;  %v112_v34 = vcombine.low %v97_v27, %v98_v28 }
  0xaa   :  { %v128_v35 = vcombine.low %v99_v29, %v100_v30  ;;  %v129_v36 = vcombine.low %v101_v31, %v102_v32 }
  0xab   :  { %v119_v37 = vrot.slane %v111_v33, %v59_v14  ;;  %v126_v38 = vrot.slane %v112_v34, %v59_v14 }
  0xac   :  { %v136_v39 = vrot.slane %v128_v35, %v59_v14  ;;  %v143_v40 = vrot.slane %v129_v36, %v59_v14 }
  0xad   :  { %v127_v41 = vcombine.low %v119_v37, %v126_v38 }
  0xae   :  { %v144_v42 = vcombine.low %v136_v39, %v143_v40 }
  0xaf   :  { %v147_v43 = vadd.f32 %v127_v41, %v40_v5 }
  0xb0   :  { %v148_v44 = vadd.f32 %v144_v42, %v41_v7 }
  0xb1   :  { %149 = vst [vmem:[#allocation7] sm:$0xff] %v147_v43 }
  0xb2   :  { %150 = vst [vmem:[#allocation7 + $0x8] sm:$0xff] %v148_v44 }
  0xb3   :  { %228 = shalt.err (!%p225_p6)
}
  0xb4   :  { %s229_s13 = scalar_lea.hbm %s312_s3, 256 }
  0xb5   :  { %p230_p7 = scmp.ne.s32.totalorder %s312_s3, %s229_s13  ;;  %p233_p8 = scmp.lt.u32.totalorder %s229_s13, %s312_s3 }
  0xb7   :  { %p235_p9 = pnand %p233_p8, %p230_p7 }
  0xb9   :  { %238 = shalt.err (!%p235_p9)
}
  0xba   :  { %160 = dma.vmem_to_hbm [thread:$0]  %s158_s2, 256, %s312_s3, [#allocation4]  }
  0xbb   :  { %243 = dma.done.wait [#allocation4], 256  }
  0xbc   :  { %244 = vsyncadd [#allocation4], 4294967040 }
  0xbd   :  { %164 = vsyncpa [#allocation3], 1 }
  0xbe   :  { %165 = vsyncpa [#allocation6], 1 }
  0xbf   :  { %166 = vsyncpa [#allocation4], 1 }

</bundles_post_ra>
